<compile_context>
chip_gen: v5e
topology: v5e:2x2
jax: 0.10.0
libtpu: 0.0.40
codegen_flags: <defaults>
</compile_context>

<pallas_src>
import jax
import jax.numpy as jnp
from jax.experimental import pallas as pl
from jax.experimental.pallas import tpu as pltpu

# ---------------- config (small, consistent with the module) ----------------
IMAGE_SIZE = (16, 16)
PATCH_SIZE = (4, 4)
NUM_CHANNELS = 4
N_EMBD = 32
NORM_EPS = 1e-6

PH, PW = PATCH_SIZE
GH, GW = IMAGE_SIZE[0] // PH, IMAGE_SIZE[1] // PW
NUM_PATCHES = GH * GW                 # P = 16
SEQ = NUM_PATCHES + 1                 # S = 17 (cls + patches)
K_DIM = NUM_CHANNELS * PH * PW        # 64
TB_TARGET = 16                        # images per grid step (TB*SEQ = 272 rows)


def embedding_kernel(x_ref, w_ref, add_ref, gamma_ref, beta_ref, out_ref):
    # x_ref:   (TB*SEQ, K)  -- row 0 of each per-image slab is zeros (cls slot)
    # w_ref:   (K, E)
    # add_ref: (TB*SEQ, E)  -- cls+pos[0] on cls rows, bias+pos[i] elsewhere
    # gamma_ref/beta_ref: (1, E)
    # out_ref: (TB*SEQ, E)
    proj = jnp.dot(x_ref[...], w_ref[...],
                   preferred_element_type=jnp.float32)       # one big MXU pass
    emb = proj + add_ref[...]                                 # (TB*SEQ, E)

    gamma = gamma_ref[...]                                    # load once
    beta = beta_ref[...]

    mean = jnp.mean(emb, axis=-1, keepdims=True)
    var = jnp.mean(jnp.square(emb - mean), axis=-1, keepdims=True)
    inv = jax.lax.rsqrt(var + NORM_EPS)
    out_ref[...] = ((emb - mean) * inv * gamma + beta).astype(out_ref.dtype)


def extract_patches(pixel_values):
    """(B, C, H, W) -> (B, P, C*ph*pw), flattened in (c, i, j) order."""
    B, C, H, W = pixel_values.shape
    x = pixel_values.reshape(B, C, GH, PH, GW, PW)
    x = jnp.transpose(x, (0, 2, 4, 1, 3, 5))          # (B, GH, GW, C, ph, pw)
    return x.reshape(B, NUM_PATCHES, C * PH * PW)


def _embedding_forward(pixel_values, conv_w, conv_b, cls_token, pos_emb,
                       ln_gamma, ln_beta):
    B = pixel_values.shape[0]
    TB = min(B, TB_TARGET)
    n_steps = pl.cdiv(B, TB)
    Bp = n_steps * TB                                   # padded batch
    rows = TB * SEQ                                     # matmul M per step

    # ---- wrapper-side layout plumbing (batch-invariant or pure reshape) ----
    patches = extract_patches(pixel_values)                       # (B, P, K)
    # prepend one zero row per image (cls slot) and pad batch to Bp
    patches_aug = jnp.pad(patches, ((0, Bp - B), (1, 0), (0, 0)))  # (Bp, S, K)
    x2d = patches_aug.reshape(Bp * SEQ, K_DIM)

    w_flat = conv_w.reshape(N_EMBD, K_DIM).T                       # (K, E)
    pos = pos_emb.reshape(SEQ, N_EMBD)
    add_rows = jnp.concatenate(
        [cls_token.reshape(1, N_EMBD) + pos[:1],                   # cls row
         conv_b.reshape(1, N_EMBD) + pos[1:]], axis=0)             # patch rows
    add_tiled = jnp.tile(add_rows, (TB, 1))                        # (TB*S, E)
    gamma2 = ln_gamma.reshape(1, N_EMBD)
    beta2 = ln_beta.reshape(1, N_EMBD)

    out2d = pl.pallas_call(
        embedding_kernel,
        out_shape=jax.ShapeDtypeStruct((Bp * SEQ, N_EMBD), jnp.float32),
        grid_spec=pltpu.PrefetchScalarGridSpec(
            num_scalar_prefetch=0,
            grid=(n_steps,),
            in_specs=[
                pl.BlockSpec((rows, K_DIM), lambda b: (b, 0)),
                pl.BlockSpec((K_DIM, N_EMBD), lambda b: (0, 0)),
                pl.BlockSpec((rows, N_EMBD), lambda b: (0, 0)),
                pl.BlockSpec((1, N_EMBD), lambda b: (0, 0)),
                pl.BlockSpec((1, N_EMBD), lambda b: (0, 0)),
            ],
            out_specs=pl.BlockSpec((rows, N_EMBD), lambda b: (b, 0)),
        ),
        compiler_params=pltpu.CompilerParams(
            dimension_semantics=("parallel",),
            # allow the extract_patches transpose to fuse into the input DMA
            allow_input_fusion=[True, False, False, False, False],
        ),
    )(x2d, w_flat, add_tiled, gamma2, beta2)

    return out2d.reshape(Bp, SEQ, N_EMBD)[:B]


embedding_forward = jax.jit(_embedding_forward)


def reference_forward(pixel_values, conv_w, conv_b, cls_token, pos_emb,
                      ln_gamma, ln_beta):
    """Pure-JAX reference mirroring the PyTorch module (eval mode)."""
    B = pixel_values.shape[0]
    patches = extract_patches(pixel_values)                      # (B, P, K)
    w_flat = conv_w.reshape(N_EMBD, K_DIM)                       # (E, K)
    proj = jnp.einsum('bpk,ek->bpe', patches, w_flat) + conv_b   # (B, P, E)
    cls = jnp.broadcast_to(cls_token, (B, 1, N_EMBD))
    emb = jnp.concatenate([cls, proj], axis=1)                   # (B, S, E)
    emb = emb + pos_emb                                          # identity interp
    mean = jnp.mean(emb, axis=-1, keepdims=True)
    var = jnp.mean((emb - mean) ** 2, axis=-1, keepdims=True)
    return (emb - mean) * jax.lax.rsqrt(var + NORM_EPS) * ln_gamma + ln_beta


if __name__ == "__main__":
    key = jax.random.PRNGKey(0)
    k_x, k_w, k_b, k_cls, k_pos, k_g, k_bt = jax.random.split(key, 7)

    B = 2
    pixel_values = jax.random.normal(
        k_x, (B, NUM_CHANNELS, IMAGE_SIZE[0], IMAGE_SIZE[1]), jnp.float32)

    # Conv2d(in=C, out=E, kernel=patch, stride=patch) params
    conv_w = jax.random.normal(k_w, (N_EMBD, NUM_CHANNELS, PH, PW),
                               jnp.float32) * 0.05
    conv_b = jax.random.normal(k_b, (N_EMBD,), jnp.float32) * 0.05
    cls_token = jax.random.normal(k_cls, (1, 1, N_EMBD), jnp.float32)
    pos_emb = jax.random.normal(k_pos, (1, SEQ, N_EMBD), jnp.float32)
    ln_gamma = jnp.ones((N_EMBD,), jnp.float32) + \
        0.01 * jax.random.normal(k_g, (N_EMBD,), jnp.float32)
    ln_beta = 0.01 * jax.random.normal(k_bt, (N_EMBD,), jnp.float32)

    out = embedding_forward(pixel_values, conv_w, conv_b, cls_token, pos_emb,
                            ln_gamma, ln_beta)
    out = jax.block_until_ready(out)

    ref = reference_forward(pixel_values, conv_w, conv_b, cls_token, pos_emb,
                            ln_gamma, ln_beta)
    assert out.shape == (B, SEQ, N_EMBD)
    assert jnp.allclose(out, ref, atol=1e-4, rtol=1e-4), \
        float(jnp.max(jnp.abs(out - ref)))

    print("KERNEL_OK")
</pallas_src>

<mosaic_0001>
module attributes {stable_mosaic.version = 11 : i64} {
  func.func @embedding_kernel(%arg0: i32, %arg1: memref<34x64xf32, #tpu.memory_space<vmem>>, %arg2: memref<64x32xf32, #tpu.memory_space<vmem>>, %arg3: memref<34x32xf32, #tpu.memory_space<vmem>>, %arg4: memref<1x32xf32, #tpu.memory_space<vmem>>, %arg5: memref<1x32xf32, #tpu.memory_space<vmem>>, %arg6: memref<34x32xf32, #tpu.memory_space<vmem>>) attributes {dimension_semantics = [#tpu.dimension_semantics<parallel>], iteration_bounds = array<i64: 1>, scalar_prefetch = 0 : i64, scratch_operands = 0 : i64, tpu.core_type = #tpu.core_type<tc>, window_params = [{transform_indices = @transform_0, window_bounds = array<i64: 34, 64>}, {pipeline_mode = #tpu.pipeline_mode<synchronous>, transform_indices = @transform_1, window_bounds = array<i64: 64, 32>}, {pipeline_mode = #tpu.pipeline_mode<synchronous>, transform_indices = @transform_2, window_bounds = array<i64: 34, 32>}, {pipeline_mode = #tpu.pipeline_mode<synchronous>, transform_indices = @transform_3, window_bounds = array<i64: 1, 32>}, {pipeline_mode = #tpu.pipeline_mode<synchronous>, transform_indices = @transform_4, window_bounds = array<i64: 1, 32>}, {transform_indices = @transform_5, window_bounds = array<i64: 34, 32>}]} {
    %c0 = arith.constant 0 : index
    %c0_0 = arith.constant 0 : index
    %0 = vector.load %arg1[%c0, %c0_0] : memref<34x64xf32, #tpu.memory_space<vmem>>, vector<34x64xf32>
    %c0_1 = arith.constant 0 : index
    %c0_2 = arith.constant 0 : index
    %1 = vector.load %arg2[%c0_1, %c0_2] : memref<64x32xf32, #tpu.memory_space<vmem>>, vector<64x32xf32>
    %cst = arith.constant dense<0.000000e+00> : vector<34x32xf32>
    %2 = tpu.matmul %0, %1, %cst {dimension_numbers = #tpu.dot_dimension_numbers<[1], [0], [0], [1], [0, 0, 1, 1], [], []>} : vector<34x64xf32>, vector<64x32xf32>, vector<34x32xf32> -> vector<34x32xf32>
    %c0_3 = arith.constant 0 : index
    %c0_4 = arith.constant 0 : index
    %3 = vector.load %arg3[%c0_3, %c0_4] : memref<34x32xf32, #tpu.memory_space<vmem>>, vector<34x32xf32>
    %4 = arith.addf %2, %3 : vector<34x32xf32>
    %c0_5 = arith.constant 0 : index
    %c0_6 = arith.constant 0 : index
    %5 = vector.load %arg4[%c0_5, %c0_6] : memref<1x32xf32, #tpu.memory_space<vmem>>, vector<1x32xf32>
    %c0_7 = arith.constant 0 : index
    %c0_8 = arith.constant 0 : index
    %6 = vector.load %arg5[%c0_7, %c0_8] : memref<1x32xf32, #tpu.memory_space<vmem>>, vector<1x32xf32>
    %cst_9 = arith.constant dense<0.000000e+00> : vector<34xf32>
    %7 = vector.multi_reduction <add>, %4, %cst_9 [1] : vector<34x32xf32> to vector<34xf32>
    %8 = vector.shape_cast %7 : vector<34xf32> to vector<34x1xf32>
    %cst_10 = arith.constant 3.200000e+01 : f32
    %9 = vector.broadcast %cst_10 : f32 to vector<34x1xf32>
    %10 = arith.divf %8, %9 : vector<34x1xf32>
    %11 = vector.broadcast %10 : vector<34x1xf32> to vector<34x32xf32>
    %12 = arith.subf %4, %11 : vector<34x32xf32>
    %13 = arith.mulf %12, %12 : vector<34x32xf32>
    %cst_11 = arith.constant dense<0.000000e+00> : vector<34xf32>
    %14 = vector.multi_reduction <add>, %13, %cst_11 [1] : vector<34x32xf32> to vector<34xf32>
    %15 = vector.shape_cast %14 : vector<34xf32> to vector<34x1xf32>
    %cst_12 = arith.constant 3.200000e+01 : f32
    %16 = vector.broadcast %cst_12 : f32 to vector<34x1xf32>
    %17 = arith.divf %15, %16 : vector<34x1xf32>
    %cst_13 = arith.constant 9.99999997E-7 : f32
    %18 = vector.broadcast %cst_13 : f32 to vector<34x1xf32>
    %19 = arith.addf %17, %18 : vector<34x1xf32>
    %20 = math.rsqrt %19 : vector<34x1xf32>
    %21 = vector.broadcast %10 : vector<34x1xf32> to vector<34x32xf32>
    %22 = arith.subf %4, %21 : vector<34x32xf32>
    %23 = vector.broadcast %20 : vector<34x1xf32> to vector<34x32xf32>
    %24 = arith.mulf %22, %23 : vector<34x32xf32>
    %25 = vector.broadcast %5 : vector<1x32xf32> to vector<34x32xf32>
    %26 = arith.mulf %24, %25 : vector<34x32xf32>
    %27 = vector.broadcast %6 : vector<1x32xf32> to vector<34x32xf32>
    %28 = arith.addf %26, %27 : vector<34x32xf32>
    %c0_14 = arith.constant 0 : index
    %c0_15 = arith.constant 0 : index
    %29 = vector.load %arg6[%c0_14, %c0_15] : memref<34x32xf32, #tpu.memory_space<vmem>>, vector<34x32xf32>
    tpu.vector_store %arg6[%c0_14, %c0_15], %28 {strides = array<i32>} : memref<34x32xf32, #tpu.memory_space<vmem>>, vector<34x32xf32>,
    return
  }
  func.func @transform_0(%arg0: i32) -> (i32, i32) {
    %c0_i32 = arith.constant 0 : i32
    %c0_i32_0 = arith.constant 0 : i32
    return %arg0, %c0_i32 : i32, i32
  }
  func.func @transform_1(%arg0: i32) -> (i32, i32) {
    %c0_i32 = arith.constant 0 : i32
    %c0_i32_0 = arith.constant 0 : i32
    %c0_i32_1 = arith.constant 0 : i32
    return %c0_i32, %c0_i32_0 : i32, i32
  }
  func.func @transform_2(%arg0: i32) -> (i32, i32) {
    %c0_i32 = arith.constant 0 : i32
    %c0_i32_0 = arith.constant 0 : i32
    %c0_i32_1 = arith.constant 0 : i32
    return %c0_i32, %c0_i32_0 : i32, i32
  }
  func.func @transform_3(%arg0: i32) -> (i32, i32) {
    %c0_i32 = arith.constant 0 : i32
    %c0_i32_0 = arith.constant 0 : i32
    %c0_i32_1 = arith.constant 0 : i32
    return %c0_i32, %c0_i32_0 : i32, i32
  }
  func.func @transform_4(%arg0: i32) -> (i32, i32) {
    %c0_i32 = arith.constant 0 : i32
    %c0_i32_0 = arith.constant 0 : i32
    %c0_i32_1 = arith.constant 0 : i32
    return %c0_i32, %c0_i32_0 : i32, i32
  }
  func.func @transform_5(%arg0: i32) -> (i32, i32) {
    %c0_i32 = arith.constant 0 : i32
    %c0_i32_0 = arith.constant 0 : i32
    return %arg0, %c0_i32 : i32, i32
  }
}

</mosaic_0001>

<bundles_post_ra>
// kernel: tile.9
= control target key start
LH: loop header
LB: loop body
LE: loop exit
PB: predicated region body
PF: predicated region fallthrough
CT: control target
= control target key end

     0   :  { %vm3_vm0 = vcmask 261120   ;;  %s11_s6 = smov 3  ;;  %s74_s0 = inlined_call_operand.vmem [shape: f32[2,17,32], index: 0, kind: input, shape index: {}]   ;;  %s75_s1 = inlined_call_operand.vmem [shape: f32[34,32], index: 1, kind: output, shape index: {}]  }
   0x1   :  { %v2_v0 = vld [vmem:[%s74_s0] sm:$0xff]   ;;  %v26_v1 = vld [vmem:[%s74_s0 + $0x8] sm:$0xff]  }
   0x2   :  { %v28_v2 = vld [vmem:[%s74_s0 + $0x10] ss:$8 sm:%s11_s6]   ;;  %4 = vst.msk [vmem:[%s75_s1] sm:$0xff] %vm3_vm0, %v2_v0  }
   0x3   :  { %v30_v3 = vld [vmem:[%s74_s0 + $0x19] sm:$0xff]   ;;  %27 = vst.msk [vmem:[%s75_s1 + $0x8] sm:$0xff] %vm3_vm0, %v26_v1   ;;  %v32_v4 = vld [vmem:[%s74_s0 + $0x21] sm:$0xff]  }
   0x4   :  { %29 = vst.msk [vmem:[%s75_s1 + $0x10] sm:$0x3] %vm3_vm0, %v28_v2  }
   0x5   :  { %31 = vst.msk [vmem:[%s75_s1 + $0x12] sm:$0xff] %vm3_vm0, %v30_v3  }
   0x6   :  { %33 = vst.msk [vmem:[%s75_s1 + $0x1a] sm:$0xff] %vm3_vm0, %v32_v4  }

// kernel: _embedding_forward.1
= control target key start
LH: loop header
LB: loop body
LE: loop exit
PB: predicated region body
PF: predicated region fallthrough
CT: control target
= control target key end

     0   :  { %vm38_vm0 = vcmask 523264   ;;  %vm88_vm1 = vcmask 261120   ;;  %vm101_vm2 = vcmask 254976   ;;  %v276_v33 = vmov 32.0   ;;  %s422_s1 = inlined_call_operand.vmem [shape: f32[64,32], index: 1, kind: input, shape index: {}]   ;;  %s423_s0 = inlined_call_operand.vmem [shape: f32[34,64], index: 0, kind: input, shape index: {}]   ;;  %s424_s2 = inlined_call_operand.vmem [shape: f32[34,32], index: 2, kind: input, shape index: {}]   ;;  %s425_s3 = inlined_call_operand.vmem [shape: f32[1,32], index: 3, kind: input, shape index: {}]   ;;  %s426_s4 = inlined_call_operand.vmem [shape: f32[1,32], index: 4, kind: input, shape index: {}]   ;;  %s427_s5 = inlined_call_operand.vmem [shape: f32[34,32], index: 5, kind: output, shape index: {}]  }
   0x1   :  { %v32_v0 = vld [vmem:[%s422_s1 + $0x38] sm:$0xff]  ;;  %v31_v1 = vld [vmem:[%s422_s1 + $0x30] sm:$0xff]  ;;  %v30_v2 = vld [vmem:[%s422_s1 + $0x28] sm:$0xff]  ;;  %264 = vrcp.f32 %v276_v33 }
   0x2   :  { %62 = vmatpush.msra.mxu0 %v32_v0  ;;  %238 = vmatpush.msra.mxu2 %v32_v0  ;;  %v29_v3 = vld [vmem:[%s422_s1 + $0x20] sm:$0xff]  ;;  %v28_v4 = vld [vmem:[%s422_s1 + $0x18] sm:$0xff]  ;;  %v27_v5 = vld [vmem:[%s422_s1 + $0x10] sm:$0xff] }
   0x3   :  { %239 = vmatpush.msra.mxu3 %v32_v0  ;;  %237 = vmatpush.msra.mxu1 %v32_v0  ;;  %v26_v6 = vld [vmem:[%s422_s1 + $0x8] sm:$0xff]  ;;  %v25_v7 = vld [vmem:[%s422_s1] sm:$0xff]  ;;  %v22_v9 = vld [vmem:[%s423_s0 + $0x10] sm:$0xff] }
   0x4   :  { %63 = vmatpush.msra.mxu0 %v31_v1  ;;  %241 = vmatpush.msra.mxu2 %v31_v1  ;;  %v20_v8 = vld [vmem:[%s423_s0] sm:$0xff]  ;;  %v23_v10 = vld [vmem:[%s423_s0 + $0x18] sm:$0xff]  ;;  %v21_v11 = vld [vmem:[%s423_s0 + $0x8] sm:$0xff] }
   0x5   :  { %242 = vmatpush.msra.mxu3 %v31_v1  ;;  %240 = vmatpush.msra.mxu1 %v31_v1  ;;  %v24_v12 = vld [vmem:[%s423_s0 + $0x20] sm:$0x3]  ;;  %v34_v16 = vld [vmem:[%s424_s2 + $0x8] sm:$0xff]  ;;  %v35_v19 = vld [vmem:[%s424_s2 + $0x10] sm:$0xff] }
   0x6   :  { %64 = vmatpush.msra.mxu0 %v30_v2  ;;  %244 = vmatpush.msra.mxu2 %v30_v2  ;;  %v33_v13 = vld [vmem:[%s424_s2] sm:$0xff]  ;;  %v36_v26 = vld [vmem:[%s424_s2 + $0x18] sm:$0xff] }
   0x7   :  { %245 = vmatpush.msra.mxu3 %v30_v2  ;;  %243 = vmatpush.msra.mxu1 %v30_v2  ;;  %v37_v27 = vld [vmem:[%s424_s2 + $0x20] sm:$0x3]  ;;  %v265_v34 = vpop.eup %264 }
   0x8   :  { %65 = vmatpush.msra.mxu0 %v29_v3  ;;  %247 = vmatpush.msra.mxu2 %v29_v3  ;;  %v106_v35 = vmul.f32 32.0, %v265_v34  ;;  %vm110_vm3 = vweird.f32 %v265_v34 }
   0x9   :  { %248 = vmatpush.msra.mxu3 %v29_v3  ;;  %246 = vmatpush.msra.mxu1 %v29_v3 }
   0xa   :  { %66 = vmatpush.msra.mxu0 %v28_v4  ;;  %250 = vmatpush.msra.mxu2 %v28_v4  ;;  %v107_v36 = vsub.f32 1.0, %v106_v35 }
   0xb   :  { %251 = vmatpush.msra.mxu3 %v28_v4  ;;  %249 = vmatpush.msra.mxu1 %v28_v4 }
   0xc   :  { %67 = vmatpush.msra.mxu0 %v27_v5  ;;  %253 = vmatpush.msra.mxu2 %v27_v5  ;;  %v108_v37 = vmul.f32 %v265_v34, %v107_v36 }
   0xd   :  { %254 = vmatpush.msra.mxu3 %v27_v5  ;;  %252 = vmatpush.msra.mxu1 %v27_v5 }
   0xe   :  { %68 = vmatpush.msra.mxu0 %v26_v6  ;;  %256 = vmatpush.msra.mxu2 %v26_v6  ;;  %v109_v38 = vadd.f32 %v265_v34, %v108_v37 }
   0xf   :  { %257 = vmatpush.msra.mxu3 %v26_v6  ;;  %255 = vmatpush.msra.mxu1 %v26_v6 }
  0x10   :  { %69 = vmatpush.msra.mxu0 %v25_v7  ;;  %259 = vmatpush.msra.mxu2 %v25_v7  ;;  %v111_v39 = vsel %vm110_vm3, %v265_v34, %v109_v38 }
  0x11   :  { %260 = vmatpush.msra.mxu3 %v25_v7  ;;  %232 = vmatmul.msk.f32.vlgmr.msra.gmra.mxu0 %vm38_vm0, %v20_v8 }
  0x12   :  { %234 = vmatmul.msk.f32.vlgmr.msra.gmra.mxu2 %vm38_vm0, %v22_v9  ;;  %235 = vmatmul.msk.f32.vlgmr.msra.gmra.mxu3 %vm38_vm0, %v23_v10 }
  0x13   :  { %258 = vmatpush.msra.mxu1 %v25_v7 }
  0x14   :  { %233 = vmatmul.msk.f32.vlgmr.msra.gmra.mxu1 %vm38_vm0, %v21_v11 }
  0x1a   :  { %236 = vmatmul.msk.f32.gmra.mxu3 %vm38_vm0, %v24_v12 }
  0x8e   :  { %v71_v14 = vpop.f32.mrf.mxu0 }
  0x8f   :  { %v72_v15 = vadd.f32 %v71_v14, %v33_v13 }
  0x91   :  { %v89_v17 = vsel %vm88_vm1, %v72_v15, 0.0  ;;  %v74_v18 = vpop.f32.mrf.mxu1 }
  0x92   :  { %90 = vadd.xlane.f32.xlu0 %v89_v17  ;;  %v75_v20 = vadd.f32 %v74_v18, %v34_v16 }
  0x94   :  { %v92_v24 = vsel %vm88_vm1, %v75_v20, 0.0 }
  0x95   :  { %v77_v21 = vpop.f32.mrf.mxu2  ;;  %v80_v22 = vpop.f32.mrf.mxu3 }
  0x96   :  { %v78_v23 = vadd.f32 %v77_v21, %v35_v19  ;;  %v81_v28 = vadd.f32 %v80_v22, %v36_v26  ;;  %v262_v26 = vld [vmem:[%s425_s3] ss:$0 sm:$0xff] }
  0x98   :  { %v95_v25 = vsel %vm88_vm1, %v78_v23, 0.0  ;;  %v98_v32 = vsel %vm88_vm1, %v81_v28, 0.0 }
  0x99   :  { %96 = vadd.xlane.f32.xlu1 %v95_v25 }
  0x9a   :  { %93 = vadd.xlane.f32.xlu0 %v92_v24 }
  0x9d   :  { %v83_v29 = vpop.f32.mrf.mxu3 }
  0x9e   :  { %v84_v30 = vadd.f32 %v83_v29, %v37_v27 }
  0xa0   :  { %v102_v31 = vsel %vm101_vm2, %v84_v30, 0.0 }
  0xa1   :  { %103 = vadd.xlane.f32.xlu2 %v102_v31  ;;  %99 = vadd.xlane.f32.xlu1 %v98_v32 }
 0x105   :  { %v91_v40 = vpop.xlane.xlu0 %90 }
 0x106   :  { %v112_v41 = vmul.f32 %v111_v39, %v91_v40 }
 0x108   :  { %v366_v42 = vsub.f32 %v72_v15, %v112_v41 }
 0x10a   :  { %v122_v43 = vmul.f32 %v366_v42, %v366_v42 }
 0x10c   :  { %v97_v44 = vpop.xlane.xlu1 %96  ;;  %v127_v45 = vsel %vm88_vm1, %v122_v43, 0.0 }
 0x10d   :  { %v114_v46 = vmul.f32 %v111_v39, %v97_v44  ;;  %128 = vadd.xlane.f32.xlu2 %v127_v45  ;;  %v94_v47 = vpop.xlane.xlu0 %93 }
 0x10e   :  { %v113_v48 = vmul.f32 %v111_v39, %v94_v47 }
 0x10f   :  { %v371_v49 = vsub.f32 %v78_v23, %v114_v46 }
 0x110   :  { %v373_v50 = vsub.f32 %v75_v20, %v113_v48 }
 0x111   :  { %v124_v51 = vmul.f32 %v371_v49, %v371_v49 }
 0x112   :  { %v123_v52 = vmul.f32 %v373_v50, %v373_v50 }
 0x113   :  { %v133_v53 = vsel %vm88_vm1, %v124_v51, 0.0 }
 0x114   :  { %v104_v54 = vpop.xlane.xlu2 %103  ;;  %134 = vadd.xlane.f32.xlu1 %v133_v53  ;;  %v100_v55 = vpop.xlane.xlu1 %99  ;;  %v130_v56 = vsel %vm88_vm1, %v123_v52, 0.0 }
 0x115   :  { %v116_v57 = vmul.f32 %v111_v39, %v104_v54  ;;  %v115_v58 = vmul.f32 %v111_v39, %v100_v55  ;;  %131 = vadd.xlane.f32.xlu0 %v130_v56 }
 0x117   :  { %v381_v59 = vsub.f32 %v84_v30, %v116_v57  ;;  %v383_v60 = vsub.f32 %v81_v28, %v115_v58  ;;  %v263_v30 = vld [vmem:[%s426_s4] ss:$0 sm:$0xff] }
 0x119   :  { %v125_v61 = vmul.f32 %v383_v60, %v383_v60  ;;  %v126_v62 = vmul.f32 %v381_v59, %v381_v59 }
 0x11b   :  { %v136_v63 = vsel %vm88_vm1, %v125_v61, 0.0  ;;  %v139_v0 = vsel %vm101_vm2, %v126_v62, 0.0 }
 0x11c   :  { %137 = vadd.xlane.f32.xlu2 %v136_v63 }
 0x11d   :  { %140 = vadd.xlane.f32.xlu0 %v139_v0 }
 0x180   :  { %v129_v1 = vpop.xlane.xlu2 %128 }
 0x181   :  { %v142_v2 = vmul.f32 %v129_v1, %v111_v39 }
 0x183   :  { %v147_v3 = vadd.f32 1e-06, %v142_v2 }
 0x185   :  { %266 = vrsqrt.f32 %v147_v3  ;;  %vm158_vm5 = vweird.f32 %v147_v3 }
 0x187   :  { %v135_v4 = vpop.xlane.xlu1 %134 }
 0x188   :  { %v144_v5 = vmul.f32 %v135_v4, %v111_v39  ;;  %v132_v6 = vpop.xlane.xlu0 %131 }
 0x189   :  { %v143_v7 = vmul.f32 %v132_v6, %v111_v39 }
 0x18a   :  { %v149_v8 = vadd.f32 1e-06, %v144_v5 }
 0x18b   :  { %v267_v9 = vpop.eup %266  ;;  %v148_v10 = vadd.f32 1e-06, %v143_v7 }
 0x18c   :  { %v153_v11 = vmul.f32 %v267_v9, %v147_v3  ;;  %268 = vrsqrt.f32 %v149_v8  ;;  %vm159_vm4 = vweird.f32 %v267_v9  ;;  %vm178_vm9 = vweird.f32 %v149_v8 }
 0x18d   :  { %270 = vrsqrt.f32 %v148_v10  ;;  %vm160_vm6 = vmor %vm158_vm5, %vm159_vm4  ;;  %vm168_vm11 = vweird.f32 %v148_v10 }
 0x18e   :  { %v154_v12 = vmul.f32 %v267_v9, %v153_v11 }
 0x18f   :  { %v138_v13 = vpop.xlane.xlu2 %137 }
 0x190   :  { %v155_v14 = vmul.f32 0.5, %v154_v12  ;;  %v145_v15 = vmul.f32 %v138_v13, %v111_v39  ;;  %v141_v16 = vpop.xlane.xlu0 %140 }
 0x191   :  { %v146_v17 = vmul.f32 %v141_v16, %v111_v39 }
 0x192   :  { %v269_v18 = vpop.eup %268  ;;  %v156_v19 = vsub.f32 1.5, %v155_v14  ;;  %v150_v20 = vadd.f32 1e-06, %v145_v15 }
 0x193   :  { %v271_v21 = vpop.eup %270  ;;  %v173_v22 = vmul.f32 %v269_v18, %v149_v8  ;;  %v151_v23 = vadd.f32 1e-06, %v146_v17  ;;  %vm179_vm7 = vweird.f32 %v269_v18 }
 0x194   :  { %v157_v24 = vmul.f32 %v267_v9, %v156_v19  ;;  %v163_v25 = vmul.f32 %v271_v21, %v148_v10  ;;  %272 = vrsqrt.f32 %v150_v20  ;;  %vm169_vm8 = vweird.f32 %v271_v21  ;;  %vm180_vm10 = vmor %vm178_vm9, %vm179_vm7 }
 0x195   :  { %v174_v27 = vmul.f32 %v269_v18, %v173_v22  ;;  %274 = vrsqrt.f32 %v151_v23  ;;  %vm170_vm12 = vmor %vm168_vm11, %vm169_vm8  ;;  %vm188_vm15 = vweird.f32 %v150_v20  ;;  %vm198_vm3 = vweird.f32 %v151_v23 }
 0x196   :  { %v161_v28 = vsel %vm160_vm6, %v267_v9, %v157_v24  ;;  %v164_v29 = vmul.f32 %v271_v21, %v163_v25 }
 0x197   :  { %v202_v31 = vmul.f32 %v161_v28, %v366_v42  ;;  %v175_v32 = vmul.f32 0.5, %v174_v27 }
 0x198   :  { %v165_v33 = vmul.f32 0.5, %v164_v29 }
 0x199   :  { %v210_v34 = vmul.f32 %v262_v26, %v202_v31  ;;  %v176_v35 = vsub.f32 1.5, %v175_v32 }
 0x19a   :  { %v273_v36 = vpop.eup %272  ;;  %v166_v37 = vsub.f32 1.5, %v165_v33 }
 0x19b   :  { %v275_v38 = vpop.eup %274  ;;  %v218_v39 = vadd.f32 %v263_v30, %v210_v34  ;;  %v177_v40 = vmul.f32 %v269_v18, %v176_v35  ;;  %v183_v41 = vmul.f32 %v273_v36, %v150_v20  ;;  %vm189_vm13 = vweird.f32 %v273_v36 }
 0x19c   :  { %v167_v43 = vmul.f32 %v271_v21, %v166_v37  ;;  %v193_v44 = vmul.f32 %v275_v38, %v151_v23  ;;  %vm199_vm14 = vweird.f32 %v275_v38  ;;  %vm190_vm0 = vmor %vm188_vm15, %vm189_vm13 }
 0x19d   :  { %223 = vst.msk [vmem:[%s427_s5] sm:$0xff] %vm88_vm1, %v218_v39  ;;  %v181_v42 = vsel %vm180_vm10, %v269_v18, %v177_v40  ;;  %v184_v45 = vmul.f32 %v273_v36, %v183_v41  ;;  %vm200_vm4 = vmor %vm198_vm3, %vm199_vm14 }
 0x19e   :  { %v204_v46 = vmul.f32 %v181_v42, %v371_v49  ;;  %v171_v47 = vsel %vm170_vm12, %v271_v21, %v167_v43  ;;  %v194_v48 = vmul.f32 %v275_v38, %v193_v44 }
 0x19f   :  { %v203_v51 = vmul.f32 %v171_v47, %v373_v50  ;;  %v185_v52 = vmul.f32 0.5, %v184_v45 }
 0x1a0   :  { %v212_v53 = vmul.f32 %v262_v26, %v204_v46  ;;  %v195_v54 = vmul.f32 0.5, %v194_v48 }
 0x1a1   :  { %v211_v55 = vmul.f32 %v262_v26, %v203_v51  ;;  %v186_v56 = vsub.f32 1.5, %v185_v52 }
 0x1a2   :  { %v220_v57 = vadd.f32 %v263_v30, %v212_v53  ;;  %v196_v58 = vsub.f32 1.5, %v195_v54 }
 0x1a3   :  { %v219_v61 = vadd.f32 %v263_v30, %v211_v55  ;;  %v187_v62 = vmul.f32 %v273_v36, %v186_v56 }
 0x1a4   :  { %225 = vst.msk [vmem:[%s427_s5 + $0x10] sm:$0xff] %vm88_vm1, %v220_v57  ;;  %v197_v49 = vmul.f32 %v275_v38, %v196_v58 }
 0x1a5   :  { %224 = vst.msk [vmem:[%s427_s5 + $0x8] sm:$0xff] %vm88_vm1, %v219_v61  ;;  %v191_v50 = vsel %vm190_vm0, %v273_v36, %v187_v62 }
 0x1a6   :  { %v205_v63 = vmul.f32 %v191_v50, %v383_v60  ;;  %v201_v0 = vsel %vm200_vm4, %v275_v38, %v197_v49 }
 0x1a7   :  { %v206_v1 = vmul.f32 %v201_v0, %v381_v59 }
 0x1a8   :  { %v213_v2 = vmul.f32 %v262_v26, %v205_v63 }
 0x1a9   :  { %v214_v3 = vmul.f32 %v262_v26, %v206_v1 }
 0x1aa   :  { %v221_v4 = vadd.f32 %v263_v30, %v213_v2 }
 0x1ab   :  { %v222_v5 = vadd.f32 %v263_v30, %v214_v3 }
 0x1ac   :  { %226 = vst.msk [vmem:[%s427_s5 + $0x18] sm:$0xff] %vm88_vm1, %v221_v4 }
 0x1ad   :  { %227 = vst.msk [vmem:[%s427_s5 + $0x20] sm:$0x3] %vm101_vm2, %v222_v5 }

</bundles_post_ra>
